<compile_context>
chip_gen: v5e
topology: v5e:2x2
jax: 0.10.0
libtpu: 0.0.40
codegen_flags: <defaults>
</compile_context>

<pallas_src>
import functools

import jax
import jax.numpy as jnp
from jax.experimental import pallas as pl

F32 = jnp.float32
BF16 = jnp.bfloat16

# ---------------------------------------------------------------------------
# Pallas kernels
# ---------------------------------------------------------------------------

def _mm_bias_kernel(a_ref, b_ref, bias_ref, o_ref):
    o_ref[...] = (jnp.dot(a_ref[...], b_ref[...],
                          preferred_element_type=jnp.float32) + bias_ref[...])


def _mm_bias_tanh_kernel(a_ref, b_ref, bias_ref, o_ref):
    o_ref[...] = jnp.tanh(jnp.dot(a_ref[...], b_ref[...],
                                  preferred_element_type=jnp.float32)
                          + bias_ref[...])


def _ln(x, g, b):
    """LayerNorm over the full (C*H*W) feature block per batch row.
    x: (B, R, 128); g, b: (1, R, 128)."""
    n = x.shape[1] * x.shape[2]
    s = jnp.sum(x, axis=2, keepdims=True)
    s = jnp.sum(s, axis=1, keepdims=True)
    mean = s / n
    xc = x - mean
    v = jnp.sum(xc * xc, axis=2, keepdims=True)
    v = jnp.sum(v, axis=1, keepdims=True)
    return xc * jax.lax.rsqrt(v / n + 1e-5) * g + b


def _gru_stage1_kernel(xc_ref, hck_ref, gx_ref, bx_ref, gh_ref, bh_ref,
                       gk_ref, bk_ref, n_ref, zx_ref, k_ref):
    # xc: LN(conv_x(x_t)) raw; hck: merged [conv_h(h_t) | key(h_t)] raw.
    R = n_ref.shape[1]
    xc = _ln(xc_ref[...], gx_ref[...], bx_ref[...])
    hck = hck_ref[...]
    hc = _ln(hck[:, :2 * R], gh_ref[...], bh_ref[...])
    kc = _ln(hck[:, 2 * R:], gk_ref[...], bk_ref[...])
    r_x, z_x, n_x = xc[:, :R], xc[:, R:2 * R], xc[:, 2 * R:]
    r_h, n_h = hc[:, :R], hc[:, R:]
    r = jax.nn.sigmoid(r_x + r_h)
    n_ref[...] = jnp.tanh(n_x + r * n_h)
    zx_ref[...] = z_x
    k_ref[...] = kc


def _gru_att_kernel(qzn_ref, gq_ref, bq_ref, gz_ref, bz_ref,
                    k_ref, r_ref, att_ref, zn_ref):
    # qzn: merged [query(n_t) | conv_zn(n_t)] raw.  k, r: (m, B, R, 128).
    R = att_ref.shape[1]
    qzn = qzn_ref[...]
    q = _ln(qzn[:, :R], gq_ref[...], bq_ref[...])
    zn_ref[...] = _ln(qzn[:, R:], gz_ref[...], bz_ref[...])
    s = q[None] * k_ref[...]
    s = s - jnp.max(s, axis=0, keepdims=True)
    e = jnp.exp(s)
    p = e / jnp.sum(e, axis=0, keepdims=True)
    att_ref[...] = jnp.sum(p * r_ref[...], axis=0)


def _gru_final_kernel(zh_ref, ga_ref, ba_ref, zx_ref, zn_ref, n_ref, att_ref,
                      h_ref):
    zh = _ln(zh_ref[...], ga_ref[...], ba_ref[...])
    z = jax.nn.sigmoid(zx_ref[...] + zh + zn_ref[...] + 1.0)   # forget_bias = 1
    h_ref[...] = (1.0 - z) * n_ref[...] + z * att_ref[...]


def _flow_attn_kernel(q_ref, res_ref, krt_ref, dis_ref, o_ref):
    # q:(N,C); res,krt:(N,K,C) (K on sublanes, C on lanes); dis:(1,K,1).
    s = jnp.sum(krt_ref[...] * q_ref[...][:, None, :], axis=-1, keepdims=True)
    s = s * dis_ref[...]   # matches reference: raw prior multiply, then softmax
    s = s - jnp.max(s, axis=1, keepdims=True)
    e = jnp.exp(s)
    p = e / jnp.sum(e, axis=1, keepdims=True)
    o_ref[...] = jnp.tanh(jnp.sum(res_ref[...] * p, axis=1))


def _flow_gate_kernel(g_ref, gg_ref, bg_ref, f_ref, ff_ref, o_ref):
    R = f_ref.shape[1]
    g = _ln(g_ref[...], gg_ref[...], bg_ref[...])
    gate = jax.nn.sigmoid(g[:, :R] + g[:, R:2 * R] + g[:, 2 * R:])
    o_ref[...] = gate * f_ref[...] + (1.0 - gate) * ff_ref[...]


def _trend_fuse_kernel(mp_ref, cat_ref, h_ref, o_ref):
    # softmax over the 3 trend candidates + weighted sum + residual add.
    s = mp_ref[...]
    s = s - jnp.max(s, axis=0, keepdims=True)
    e = jnp.exp(s)
    p = e / jnp.sum(e, axis=0, keepdims=True)
    o_ref[...] = h_ref[...] + jnp.sum(p * cat_ref[...], axis=0)


# ---------------------------------------------------------------------------
# Pallas wrappers (jitted so each unique shape compiles once and is reused)
# ---------------------------------------------------------------------------

@functools.partial(jax.jit, static_argnames=("activation",))
def pallas_matmul(a, b, bias=None, activation="none"):
    """act(a @ b + bias).  Single full-VMEM block, bf16 MXU inputs, f32 accum."""
    M, K = a.shape
    N = b.shape[1]
    if bias is None:
        bias = jnp.zeros((N,), F32)
    kern = _mm_bias_tanh_kernel if activation == "tanh" else _mm_bias_kernel
    return pl.pallas_call(
        kern,
        out_shape=jax.ShapeDtypeStruct((M, N), F32),
    )(a.astype(BF16), b.astype(BF16), bias.reshape(1, N).astype(F32))


@functools.partial(jax.jit,
                   static_argnames=("ksize", "stride", "padding", "activation"))
def conv2d(x, w, bias, ksize, stride=1, padding=0, activation="none"):
    """x:(B,C,H,W) NCHW; w:(O,C,kh,kw) torch layout; im2col + Pallas matmul."""
    B, C, H, W = x.shape
    O = w.shape[0]
    kh = kw = ksize
    xp = jnp.pad(x, ((0, 0), (0, 0), (padding, padding), (padding, padding)))
    Ho = (H + 2 * padding - kh) // stride + 1
    Wo = (W + 2 * padding - kw) // stride + 1
    cols = []
    for i in range(kh):
        for j in range(kw):
            cols.append(xp[:, :, i:i + stride * (Ho - 1) + 1:stride,
                              j:j + stride * (Wo - 1) + 1:stride])
    p = jnp.stack(cols, axis=2)                               # (B,C,kh*kw,Ho,Wo)
    p = p.transpose(0, 3, 4, 1, 2).reshape(B * Ho * Wo, C * kh * kw)
    w2 = w.reshape(O, C * kh * kw).T
    out = pallas_matmul(p, w2, bias, activation=activation)
    return out.reshape(B, Ho, Wo, O).transpose(0, 3, 1, 2)


# --- sub-pixel (direct) stride-2 transposed conv -----------------------------

def _subpixel_weight(w):
    """torch ConvTranspose2d(Ci,Co,3,s=2,p=1,op=1) weight -> (4*Ci, 4*Co)."""
    Ci, Co = w.shape[0], w.shape[1]
    Z = jnp.zeros((Ci, Co), F32)

    def blk(t0, t1, t2, t3):
        return jnp.concatenate([t0, t1, t2, t3], axis=0)       # taps t0..t3

    w00 = blk(w[:, :, 1, 1], Z, Z, Z)
    w01 = blk(w[:, :, 1, 2], w[:, :, 1, 0], Z, Z)
    w10 = blk(w[:, :, 2, 1], Z, w[:, :, 0, 1], Z)
    w11 = blk(w[:, :, 2, 2], w[:, :, 2, 0], w[:, :, 0, 2], w[:, :, 0, 0])
    return jnp.concatenate([w00, w01, w10, w11], axis=1)       # pos-major cols


def _deconv2x_patches(x):
    """Taps [x(m,n), x(m,n+1), x(m+1,n), x(m+1,n+1)] -> (B*H*W, 4*Ci)."""
    B, Ci, H, W = x.shape
    xp = jnp.pad(x, ((0, 0), (0, 0), (0, 1), (0, 1)))
    taps = [xp[:, :, :H, :W], xp[:, :, :H, 1:], xp[:, :, 1:, :W], xp[:, :, 1:, 1:]]
    p = jnp.stack(taps, axis=1)                                # (B,4,Ci,H,W)
    return p.transpose(0, 3, 4, 1, 2).reshape(B * H * W, 4 * Ci)


def _scatter2x(out_flat, B, H, W, Co):
    """(B*H*W, 4*Co) with pos-major columns -> NCHW (B, Co, 2H, 2W)."""
    o = out_flat.reshape(B, H, W, 2, 2, Co)
    o = o.transpose(0, 1, 3, 2, 4, 5).reshape(B, 2 * H, 2 * W, Co)
    return o.transpose(0, 3, 1, 2)


@functools.partial(jax.jit, static_argnames=("activation",))
def conv_transpose2x(x, w, activation="none"):
    """torch ConvTranspose2d(Ci,Co,3,stride=2,padding=1,output_padding=1,bias=False)."""
    B, Ci, H, W = x.shape
    Co = w.shape[1]
    out = pallas_matmul(_deconv2x_patches(x), _subpixel_weight(w), None,
                        activation=activation)
    return _scatter2x(out, B, H, W, Co)


# --- fused elementwise wrappers ---------------------------------------------

@jax.jit
def gru_stage1(xc, hck, gx, bx, gh, bh, gk, bk):
    B, R3, _ = xc.shape
    R = R3 // 3
    return pl.pallas_call(
        _gru_stage1_kernel,
        out_shape=(jax.ShapeDtypeStruct((B, R, 128), F32),
                   jax.ShapeDtypeStruct((B, R, 128), F32),
                   jax.ShapeDtypeStruct((B, R, 128), F32)),
    )(xc, hck,
      gx.reshape(1, R3, 128), bx.reshape(1, R3, 128),
      gh.reshape(1, 2 * R, 128), bh.reshape(1, 2 * R, 128),
      gk.reshape(1, R, 128), bk.reshape(1, R, 128))


@jax.jit
def gru_att(qzn, gq, bq, gz, bz, k_stack, r_stack):
    B, R2, _ = qzn.shape
    R = R2 // 2
    return pl.pallas_call(
        _gru_att_kernel,
        out_shape=(jax.ShapeDtypeStruct((B, R, 128), F32),
                   jax.ShapeDtypeStruct((B, R, 128), F32)),
    )(qzn,
      gq.reshape(1, R, 128), bq.reshape(1, R, 128),
      gz.reshape(1, R, 128), bz.reshape(1, R, 128),
      k_stack, r_stack)


@jax.jit
def gru_final(zh, ga, ba, zx, zn, n_t, att):
    B, R, _ = zh.shape
    return pl.pallas_call(
        _gru_final_kernel,
        out_shape=jax.ShapeDtypeStruct((B, R, 128), F32),
    )(zh, ga.reshape(1, R, 128), ba.reshape(1, R, 128), zx, zn, n_t, att)


# ---------------------------------------------------------------------------
# Module forwards
# ---------------------------------------------------------------------------

def _flat3(x):
    return x.reshape(x.shape[0], -1, 128)


def convgru_cell(p, x_t, h_hist, k_cache):
    """ConvGRUCell.forward -> (h_new NCHW, cached LN(key(h_t)) for history)."""
    B, nh, H, W = x_t.shape
    xc_raw = conv2d(x_t, p["x_w"], p["x_b"], ksize=5, stride=1, padding=2)
    hck_raw = conv2d(h_hist[-1], p["hk_w"], p["hk_b"], ksize=5, stride=1, padding=2)
    n_t3, zx3, k_new = gru_stage1(_flat3(xc_raw), _flat3(hck_raw),
                                  p["x_g"], p["x_beta"], p["h_g"], p["h_beta"],
                                  p["k_g"], p["k_beta"])
    n_t = n_t3.reshape(B, nh, H, W)
    qzn_raw = conv2d(n_t, p["qzn_w"], p["qzn_b"], ksize=5, stride=1, padding=2)
    l = len(h_hist)
    if l == 1:
        ks_ = [k_new]
        rs_ = [_flat3(h_hist[0])]
    else:
        ks_ = list(k_cache[1:]) + [k_new]
        rs_ = [_flat3(h_hist[i]) for i in range(1, l)]
    k_stack = jnp.stack(ks_, axis=0)
    r_stack = jnp.stack(rs_, axis=0)
    att3, zn3 = gru_att(_flat3(qzn_raw), p["q_g"], p["q_beta"],
                        p["zn_g"], p["zn_beta"], k_stack, r_stack)
    att_h = att3.reshape(B, nh, H, W)
    zh_raw = conv2d(att_h, p["atth_w"], p["atth_b"], ksize=5, stride=1, padding=2)
    h_new3 = gru_final(_flat3(zh_raw), p["atth_g"], p["atth_beta"],
                       zx3, zn3, n_t3, att3)
    return h_new3.reshape(B, nh, H, W), k_new


@jax.jit
def flowrnn_cell(p, x, f_t, dis):
    """FlowRNNCell.forward (local 5x5 flow attention + gated blend)."""
    B, C, H, W = x.shape
    ks, pad = 5, 2
    K = ks * ks
    N = B * H * W
    x_nhwc = x.transpose(0, 2, 3, 1)
    xp = jnp.pad(x_nhwc, ((0, 0), (pad, pad), (pad, pad), (0, 0)), mode="edge")
    cols = [xp[:, di:di + H, dj:dj + W, :] for di in range(ks) for dj in range(ks)]
    res = jnp.stack(cols, axis=3) - x_nhwc[:, :, :, None, :]    # (B,H,W,K,C)
    res_nkc = res.reshape(N, K, C)
    # 1x1 key conv (no bias): one (N*K, C) @ (C, C) block.
    krt = pallas_matmul(res_nkc.reshape(N * K, C),
                        p["key_w"].reshape(C, C).T).reshape(N, K, C)
    q = conv2d(f_t, p["query_w"], None, ksize=3, stride=1, padding=1)
    q_flat = q.transpose(0, 2, 3, 1).reshape(N, C)
    ff_flat = pl.pallas_call(
        _flow_attn_kernel,
        out_shape=jax.ShapeDtypeStruct((N, C), F32),
    )(q_flat, res_nkc, krt, dis.reshape(1, K, 1))
    ff = ff_flat.reshape(B, H, W, C).transpose(0, 3, 1, 2)
    g_raw = conv2d(jnp.concatenate([x, f_t, ff], axis=1),
                   p["gate_w"], p["gate_b"], ksize=5, stride=1, padding=2)
    Rf = C * H * W // 128
    f_new = pl.pallas_call(
        _flow_gate_kernel,
        out_shape=jax.ShapeDtypeStruct((B, Rf, 128), F32),
    )(g_raw.reshape(B, 3 * Rf, 128),
      p["gate_g"].reshape(1, 3 * Rf, 128), p["gate_beta"].reshape(1, 3 * Rf, 128),
      f_t.reshape(B, Rf, 128), ff.reshape(B, Rf, 128))
    return f_new.reshape(B, C, H, W)


@jax.jit
def trend_fusion(ds_w, fcs_w, fo_t, ho_t, ft, h_t):
    """TrendRNNCell.trend_fusion, plus the residual h_t + trend add."""
    B, C, H, W = fo_t.shape
    cat = jnp.stack([fo_t, ho_t, ft], axis=0)                   # (3,B,C,H,W)
    avg = jnp.mean(cat, axis=0)
    avg = conv2d(avg, ds_w, None, ksize=3, stride=2, padding=1) # (B,C/2,H/2,W/2)
    h2, w2 = H // 2, W // 2
    # Three stride-2 transposed convs share one im2col -> one tanh matmul.
    wm = jnp.concatenate([_subpixel_weight(w) for w in fcs_w], axis=1)
    mp = pallas_matmul(_deconv2x_patches(avg), wm, None, activation="tanh")
    mp = mp.reshape(B, h2, w2, 3, 2, 2, C)
    mp = mp.transpose(3, 0, 6, 1, 4, 2, 5).reshape(3, B, C, H, W)
    Rf = C * H * W // 128
    h_new = pl.pallas_call(
        _trend_fuse_kernel,
        out_shape=jax.ShapeDtypeStruct((B, Rf, 128), F32),
    )(mp.reshape(3, B, Rf, 128), cat.reshape(3, B, Rf, 128),
      h_t.reshape(B, Rf, 128))
    return h_new.reshape(B, C, H, W)


def ec_forward(pp, x):
    y = conv2d(x, pp["ec_w1"], None, ksize=3, stride=1, padding=1)
    return conv2d(y, pp["ec_w2"], None, ksize=3, stride=2, padding=1)


def dc_forward(pp, h):
    y = conv_transpose2x(h, pp["dc_w1"])
    return conv2d(y, pp["dc_w2f"], None, ksize=3, stride=1, padding=1)


# ---------------------------------------------------------------------------
# Parameter prep (weight merging) and full forward
# ---------------------------------------------------------------------------

def _pad3to5(w):
    return jnp.pad(w, ((0, 0), (0, 0), (1, 1), (1, 1)))


def prepare_params(params):
    """Merge weights that share an im2col input; pre-flip the stride-1 deconv."""
    pp = dict(params)
    gru = dict(params["gru"])
    gru["hk_w"] = jnp.concatenate([gru["h_w"], _pad3to5(gru["k_w"])], axis=0)
    gru["hk_b"] = jnp.concatenate([gru["h_b"], gru["k_b"]], axis=0)
    gru["qzn_w"] = jnp.concatenate([_pad3to5(gru["q_w"]), gru["zn_w"]], axis=0)
    gru["qzn_b"] = jnp.concatenate([gru["q_b"], gru["zn_b"]], axis=0)
    pp["gru"] = gru
    pp["dc_w2f"] = jnp.flip(params["dc_w2"], axis=(2, 3)).transpose(1, 0, 2, 3)
    return pp


def trendrnn_forward(params, frames, cfg, dis, il=6, input_flag=None,
                     train_flag=True):
    b, l, H, W, c = frames.shape
    height, width = H // 2, W // 2
    nh = 64
    pp = prepare_params(params)
    gru_p = pp["gru"]
    ft_p = pp["trend"]["ft"]
    ds_w = pp["trend"]["ds_w"]
    fcs_w = tuple(pp["trend"]["fcs_w"])

    res = []
    h_t = jnp.zeros((b, nh, height, width), F32)
    f_t = jnp.zeros((b, nh, height, width), F32)
    hho_t1_list = [jnp.zeros((b, nh, height, width), F32)]
    k_cache = []            # cached LN(key(h)) for each history entry
    ho_t1_list = []
    xh_list = []
    T = cfg["input_length"] + cfg["output_length"] - 1
    for t in range(T):
        if t < il:
            xt = jnp.transpose(frames[:, t], (0, 3, 1, 2))
        elif train_flag:
            mix = (input_flag[:, t - cfg["input_length"]] * frames[:, t]
                   + (1 - input_flag[:, t - cfg["input_length"]])
                   * jnp.transpose(res[-1], (0, 2, 3, 1)))
            xt = jnp.transpose(mix, (0, 3, 1, 2))
        else:
            xt = res[-1]
        xt = ec_forward(pp, xt)
        if t <= 1:
            xh = jnp.concatenate([xt, xt], axis=1)
        else:
            xh = jnp.concatenate([xt, h_t], axis=1)
        xh = conv2d(xh, pp["xh_w"], pp["xh_b"], ksize=3, stride=1, padding=1)
        xh_list.append(xh)
        if t == 0:
            continue
        fo_t = xh_list[-1] - xh_list[-2]
        hho_t1, k_new = convgru_cell(gru_p, fo_t, hho_t1_list, k_cache)
        k_cache.append(k_new)
        hho_t1_list.append(hho_t1)
        ho_t1 = conv2d(hho_t1, pp["ho_w"], pp["ho_b"], ksize=3, stride=1, padding=1)
        ho_t1_list.append(ho_t1)
        # TODO(synk): args.high_order_trend branch (second ConvGRU) disabled in
        # this config; ho_fusion over a single-entry bank is the identity.
        ho_t = ho_t1
        f_t = flowrnn_cell(ft_p, xh, f_t, dis)
        h_t = trend_fusion(ds_w, fcs_w, fo_t, ho_t, f_t, h_t)
        res.append(dc_forward(pp, h_t))

    trend_true = [xh_list[i] - xh_list[i - 1] for i in range(1, len(xh_list))]
    if train_flag:
        xt = jnp.transpose(frames[:, -1], (0, 3, 1, 2))
    else:
        xt = res[-1]
    xt = ec_forward(pp, xt)
    xh = conv2d(jnp.concatenate([xt, h_t], axis=1), pp["xh_w"], pp["xh_b"],
                ksize=3, stride=1, padding=1)
    trend_true.append(xh - xh_list[-1])
    trend_true = jnp.stack(trend_true, axis=1).transpose(0, 1, 3, 4, 2)[:, 1:]
    res_arr = jnp.stack(res, axis=1).transpose(0, 1, 3, 4, 2)
    ol = cfg["output_length"]
    loss = jnp.mean((res_arr[:, -ol - 2:] - frames[:, -ol - 2:]) ** 2)
    ho_arr = jnp.stack(ho_t1_list, axis=1).transpose(0, 1, 3, 4, 2)
    loss = loss + jnp.mean((ho_arr - trend_true) ** 2)
    return res_arr, loss


# ---------------------------------------------------------------------------
# Deterministic parameter init & prior distance
# ---------------------------------------------------------------------------

def init_distance(ks=5):
    c = (ks - 1) // 2
    idx = jnp.arange(ks, dtype=F32) - c
    d2 = idx[:, None] ** 2 + idx[None, :] ** 2
    dis = jnp.exp(-d2 / float((ks - 1) * (ks - 1)))
    dis = dis.at[c, c].set(0.0)
    return dis


def init_params(key, hw):
    h, w = hw
    nh = 64
    keys = iter(jax.random.split(key, 128))

    def Wt(*shape):
        return 0.05 * jax.random.normal(next(keys), shape, F32)

    def Bc(n):
        return 0.02 * jax.random.normal(next(keys), (n,), F32)

    def LN(c):
        return (1.0 + 0.05 * jax.random.normal(next(keys), (c * h * w,), F32),
                0.02 * jax.random.normal(next(keys), (c * h * w,), F32))

    p = {"ec_w1": Wt(32, 1, 3, 3), "ec_w2": Wt(nh, 32, 3, 3)}
    p["xh_w"], p["xh_b"] = Wt(nh, 2 * nh, 3, 3), Bc(nh)
    p["ho_w"], p["ho_b"] = Wt(nh, nh, 3, 3), Bc(nh)

    gru = {}
    gru["x_w"], gru["x_b"] = Wt(3 * nh, nh, 5, 5), Bc(3 * nh)
    gru["x_g"], gru["x_beta"] = LN(3 * nh)
    gru["h_w"], gru["h_b"] = Wt(2 * nh, nh, 5, 5), Bc(2 * nh)
    gru["h_g"], gru["h_beta"] = LN(2 * nh)
    gru["zn_w"], gru["zn_b"] = Wt(nh, nh, 5, 5), Bc(nh)
    gru["zn_g"], gru["zn_beta"] = LN(nh)
    gru["atth_w"], gru["atth_b"] = Wt(nh, nh, 5, 5), Bc(nh)
    gru["atth_g"], gru["atth_beta"] = LN(nh)
    gru["q_w"], gru["q_b"] = Wt(nh, nh, 3, 3), Bc(nh)
    gru["q_g"], gru["q_beta"] = LN(nh)
    gru["k_w"], gru["k_b"] = Wt(nh, nh, 3, 3), Bc(nh)
    gru["k_g"], gru["k_beta"] = LN(nh)
    p["gru"] = gru

    ft = {"query_w": Wt(nh, nh, 3, 3), "key_w": Wt(nh, nh, 1, 1)}
    ft["gate_w"], ft["gate_b"] = Wt(3 * nh, 3 * nh, 5, 5), Bc(3 * nh)
    ft["gate_g"], ft["gate_beta"] = LN(3 * nh)
    trend = {"ft": ft,
             "ds_w": Wt(nh // 2, nh, 3, 3),
             "fcs_w": [Wt(nh // 2, nh, 3, 3) for _ in range(3)]}
    p["trend"] = trend

    p["dc_w1"] = Wt(nh, 32, 3, 3)
    p["dc_w2"] = Wt(32, 1, 3, 3)
    return p


# ---------------------------------------------------------------------------
# Main
# ---------------------------------------------------------------------------

if __name__ == "__main__":
    key = jax.random.PRNGKey(0)
    kp, kf = jax.random.split(key)
    cfg = {"input_length": 4, "output_length": 2,
           "prior_distance": True, "high_order_trend": False}
    b, Himg, Wimg = 2, 16, 16
    seq = cfg["input_length"] + cfg["output_length"]
    frames = jax.random.normal(kf, (b, seq, Himg, Wimg, 1), F32)

    params = init_params(kp, (Himg // 2, Wimg // 2))
    dis = (init_distance(5).reshape(-1) if cfg["prior_distance"]
           else jnp.ones((25,), F32))

    res, loss = trendrnn_forward(params, frames, cfg, dis, il=6, train_flag=True)
    jax.block_until_ready((res, loss))

    assert res.shape == (b, seq - 2, Himg, Wimg, 1), res.shape
    assert bool(jnp.isfinite(loss)), "loss is not finite"
    print("KERNEL_OK")
</pallas_src>

<mosaic_0001>
module attributes {stable_mosaic.version = 11 : i64} {
  func.func @_mm_bias_kernel(%arg0: memref<512x9xbf16, #tpu.memory_space<vmem>>, %arg1: memref<9x32xbf16, #tpu.memory_space<vmem>>, %arg2: memref<1x32xf32, #tpu.memory_space<vmem>>, %arg3: memref<512x32xf32, #tpu.memory_space<vmem>>) attributes {dimension_semantics = [], scalar_prefetch = 0 : i64, scratch_operands = 0 : i64, tpu.core_type = #tpu.core_type<tc>} {
    %c0 = arith.constant 0 : index
    %c0_0 = arith.constant 0 : index
    %0 = vector.load %arg0[%c0, %c0_0] : memref<512x9xbf16, #tpu.memory_space<vmem>>, vector<512x9xbf16>
    %c0_1 = arith.constant 0 : index
    %c0_2 = arith.constant 0 : index
    %1 = vector.load %arg1[%c0_1, %c0_2] : memref<9x32xbf16, #tpu.memory_space<vmem>>, vector<9x32xbf16>
    %cst = arith.constant dense<0.000000e+00> : vector<512x32xf32>
    %2 = tpu.matmul %0, %1, %cst {dimension_numbers = #tpu.dot_dimension_numbers<[1], [0], [0], [1], [0, 0, 1, 1], [], []>} : vector<512x9xbf16>, vector<9x32xbf16>, vector<512x32xf32> -> vector<512x32xf32>
    %c0_3 = arith.constant 0 : index
    %c0_4 = arith.constant 0 : index
    %3 = vector.load %arg2[%c0_3, %c0_4] : memref<1x32xf32, #tpu.memory_space<vmem>>, vector<1x32xf32>
    %4 = vector.broadcast %3 : vector<1x32xf32> to vector<512x32xf32>
    %5 = arith.addf %2, %4 : vector<512x32xf32>
    %c0_5 = arith.constant 0 : index
    %c0_6 = arith.constant 0 : index
    %6 = vector.load %arg3[%c0_5, %c0_6] : memref<512x32xf32, #tpu.memory_space<vmem>>, vector<512x32xf32>
    tpu.vector_store %arg3[%c0_5, %c0_6], %5 {strides = array<i32>} : memref<512x32xf32, #tpu.memory_space<vmem>>, vector<512x32xf32>,
    return
  }
}

</mosaic_0001>

<bundles_post_ra>
// kernel: pallas_matmul.1
= control target key start
LH: loop header
LB: loop body
LE: loop exit
PB: predicated region body
PF: predicated region fallthrough
CT: control target
= control target key end

     0   :  { %vm347_vm0 = vcmask 1043456   ;;  %vm348_vm1 = vcmask 1044480   ;;  %v794_v2 = vmov 65535   ;;  %vm250_vm2 = vcmask 72704   ;;  %s1274_s1 = inlined_call_operand.vmem [shape: bf16[9,32], index: 1, kind: input, shape index: {}]   ;;  %s1275_s0 = inlined_call_operand.vmem [shape: bf16[512,9], index: 0, kind: input, shape index: {}]   ;;  %s1276_s2 = inlined_call_operand.vmem [shape: f32[1,32], index: 2, kind: input, shape index: {}]   ;;  %s1277_s3 = inlined_call_operand.vmem [shape: f32[512,32], index: 3, kind: output, shape index: {}]  }
   0x1   :  { %v722_v0 = vld [vmem:[%s1274_s1] sm:$0xf]  ;;  %v788_v1 = vld [vmem:[%s1274_s1] sm:$0x10]  ;;  %v349_v3 = vsel %vm347_vm0, 4294967295, %v794_v2  ;;  %v757_v11 = vld [vmem:[%s1275_s0 + $0x8] sm:$0xff] }
   0x2   :  { %v723_v4 = vor.u32 %v788_v1, %v722_v0  ;;  %v350_v5 = vsel %vm348_vm1, %v349_v3, 0  ;;  %v756_v7 = vld [vmem:[%s1275_s0] sm:$0xff]  ;;  %v765_v12 = vld [vmem:[%s1275_s0 + $0x48] sm:$0xff]  ;;  %v758_v15 = vld [vmem:[%s1275_s0 + $0x10] sm:$0xff]  ;;  %vm523_vm3 = vcmask 261120  }
   0x3   :  { %v764_v8 = vld [vmem:[%s1275_s0 + $0x40] sm:$0xff]  ;;  %v773_v13 = vld [vmem:[%s1275_s0 + $0x88] sm:$0xff]  ;;  %v766_v16 = vld [vmem:[%s1275_s0 + $0x50] sm:$0xff] }
   0x4   :  { %v352_v6 = vand.u32 %v723_v4, %v350_v5  ;;  %v772_v9 = vld [vmem:[%s1275_s0 + $0x80] sm:$0xff]  ;;  %v781_v14 = vld [vmem:[%s1275_s0 + $0xc8] sm:$0xff]  ;;  %v774_v17 = vld [vmem:[%s1275_s0 + $0x90] sm:$0xff] }
   0x5   :  { %v780_v10 = vld [vmem:[%s1275_s0 + $0xc0] sm:$0xff]  ;;  %v782_v18 = vld [vmem:[%s1275_s0 + $0xd0] sm:$0xff]  ;;  %v759_v19 = vld [vmem:[%s1275_s0 + $0x18] sm:$0xff] }
   0x6   :  { %361 = vmatpush.bf16.msra.mxu0 %v352_v6  ;;  %789 = vmatpush.bf16.msra.mxu1 %v352_v6  ;;  %v767_v20 = vld [vmem:[%s1275_s0 + $0x58] sm:$0xff]  ;;  %v760_v23 = vld [vmem:[%s1275_s0 + $0x20] sm:$0xff]  ;;  %v761_v27 = vld [vmem:[%s1275_s0 + $0x28] sm:$0xff] }
   0x7   :  { %790 = vmatpush.bf16.msra.mxu2 %v352_v6  ;;  %791 = vmatpush.bf16.msra.mxu3 %v352_v6  ;;  %v775_v21 = vld [vmem:[%s1275_s0 + $0x98] sm:$0xff]  ;;  %v768_v24 = vld [vmem:[%s1275_s0 + $0x60] sm:$0xff]  ;;  %v769_v28 = vld [vmem:[%s1275_s0 + $0x68] sm:$0xff] }
   0x8   :  { %v783_v22 = vld [vmem:[%s1275_s0 + $0xd8] sm:$0xff]  ;;  %v776_v25 = vld [vmem:[%s1275_s0 + $0xa0] sm:$0xff]  ;;  %v777_v29 = vld [vmem:[%s1275_s0 + $0xa8] sm:$0xff] }
   0x9   :  { %724 = vmatmul.msk.bf16.vlgmr.msra.gmra.mxu0 %vm250_vm2, %v756_v7  ;;  %732 = vmatmul.msk.bf16.vlgmr.msra.gmra.mxu1 %vm250_vm2, %v764_v8  ;;  %v784_v26 = vld [vmem:[%s1275_s0 + $0xe0] sm:$0xff]  ;;  %v785_v30 = vld [vmem:[%s1275_s0 + $0xe8] sm:$0xff]  ;;  %v762_v31 = vld [vmem:[%s1275_s0 + $0x30] sm:$0xff] }
   0xa   :  { %740 = vmatmul.msk.bf16.vlgmr.msra.gmra.mxu2 %vm250_vm2, %v772_v9  ;;  %748 = vmatmul.msk.bf16.vlgmr.msra.gmra.mxu3 %vm250_vm2, %v780_v10  ;;  %v770_v32 = vld [vmem:[%s1275_s0 + $0x70] sm:$0xff]  ;;  %v763_v35 = vld [vmem:[%s1275_s0 + $0x38] sm:$0xff]  ;;  %v952_v39 = vld [vmem:[%s1276_s2] ss:$0 sm:$0xff] }
   0xb   :  { %v778_v33 = vld [vmem:[%s1275_s0 + $0xb0] sm:$0xff]  ;;  %v771_v36 = vld [vmem:[%s1275_s0 + $0x78] sm:$0xff] }
   0xc   :  { %v786_v34 = vld [vmem:[%s1275_s0 + $0xf0] sm:$0xff]  ;;  %v779_v37 = vld [vmem:[%s1275_s0 + $0xb8] sm:$0xff] }
   0xd   :  { %v787_v38 = vld [vmem:[%s1275_s0 + $0xf8] sm:$0xff] }
  0x19   :  { %725 = vmatmul.msk.bf16.gmra.mxu0 %vm250_vm2, %v757_v11  ;;  %733 = vmatmul.msk.bf16.gmra.mxu1 %vm250_vm2, %v765_v12 }
  0x1a   :  { %741 = vmatmul.msk.bf16.gmra.mxu2 %vm250_vm2, %v773_v13  ;;  %749 = vmatmul.msk.bf16.gmra.mxu3 %vm250_vm2, %v781_v14 }
  0x29   :  { %726 = vmatmul.msk.bf16.gmra.mxu0 %vm250_vm2, %v758_v15  ;;  %734 = vmatmul.msk.bf16.gmra.mxu1 %vm250_vm2, %v766_v16 }
  0x2a   :  { %742 = vmatmul.msk.bf16.gmra.mxu2 %vm250_vm2, %v774_v17  ;;  %750 = vmatmul.msk.bf16.gmra.mxu3 %vm250_vm2, %v782_v18 }
  0x39   :  { %727 = vmatmul.msk.bf16.gmra.mxu0 %vm250_vm2, %v759_v19  ;;  %735 = vmatmul.msk.bf16.gmra.mxu1 %vm250_vm2, %v767_v20 }
  0x3a   :  { %743 = vmatmul.msk.bf16.gmra.mxu2 %vm250_vm2, %v775_v21  ;;  %751 = vmatmul.msk.bf16.gmra.mxu3 %vm250_vm2, %v783_v22 }
  0x49   :  { %728 = vmatmul.msk.bf16.gmra.mxu0 %vm250_vm2, %v760_v23  ;;  %736 = vmatmul.msk.bf16.gmra.mxu1 %vm250_vm2, %v768_v24 }
  0x4a   :  { %744 = vmatmul.msk.bf16.gmra.mxu2 %vm250_vm2, %v776_v25  ;;  %752 = vmatmul.msk.bf16.gmra.mxu3 %vm250_vm2, %v784_v26 }
  0x59   :  { %729 = vmatmul.msk.bf16.gmra.mxu0 %vm250_vm2, %v761_v27  ;;  %737 = vmatmul.msk.bf16.gmra.mxu1 %vm250_vm2, %v769_v28 }
  0x5a   :  { %745 = vmatmul.msk.bf16.gmra.mxu2 %vm250_vm2, %v777_v29  ;;  %753 = vmatmul.msk.bf16.gmra.mxu3 %vm250_vm2, %v785_v30 }
  0x69   :  { %730 = vmatmul.msk.bf16.gmra.mxu0 %vm250_vm2, %v762_v31  ;;  %738 = vmatmul.msk.bf16.gmra.mxu1 %vm250_vm2, %v770_v32 }
  0x6a   :  { %746 = vmatmul.msk.bf16.gmra.mxu2 %vm250_vm2, %v778_v33  ;;  %754 = vmatmul.msk.bf16.gmra.mxu3 %vm250_vm2, %v786_v34 }
  0x79   :  { %731 = vmatmul.msk.bf16.gmra.mxu0 %vm250_vm2, %v763_v35  ;;  %739 = vmatmul.msk.bf16.gmra.mxu1 %vm250_vm2, %v771_v36 }
  0x7a   :  { %747 = vmatmul.msk.bf16.gmra.mxu2 %vm250_vm2, %v779_v37  ;;  %755 = vmatmul.msk.bf16.gmra.mxu3 %vm250_vm2, %v787_v38 }
  0x86   :  { %v363_v40 = vpop.f32.mrf.mxu0  ;;  %v403_v41 = vpop.f32.mrf.mxu1 }
  0x87   :  { %v364_v42 = vadd.f32 %v952_v39, %v363_v40  ;;  %v404_v43 = vadd.f32 %v952_v39, %v403_v41 }
  0x89   :  { %524 = vst.msk [vmem:[%s1277_s3] sm:$0xff] %vm523_vm3, %v364_v42 }
  0x8a   :  { %540 = vst.msk [vmem:[%s1277_s3 + $0x80] sm:$0xff] %vm523_vm3, %v404_v43 }
  0x8d   :  { %v443_v44 = vpop.f32.mrf.mxu2  ;;  %v483_v45 = vpop.f32.mrf.mxu3 }
  0x8e   :  { %v444_v46 = vadd.f32 %v952_v39, %v443_v44  ;;  %v484_v47 = vadd.f32 %v952_v39, %v483_v45  ;;  %v365_v48 = vpop.f32.mrf.mxu0  ;;  %v405_v49 = vpop.f32.mrf.mxu1 }
  0x8f   :  { %v366_v50 = vadd.f32 %v952_v39, %v365_v48  ;;  %v406_v51 = vadd.f32 %v952_v39, %v405_v49 }
  0x90   :  { %556 = vst.msk [vmem:[%s1277_s3 + $0x100] sm:$0xff] %vm523_vm3, %v444_v46 }
  0x91   :  { %572 = vst.msk [vmem:[%s1277_s3 + $0x180] sm:$0xff] %vm523_vm3, %v484_v47 }
  0x92   :  { %525 = vst.msk [vmem:[%s1277_s3 + $0x8] sm:$0xff] %vm523_vm3, %v366_v50 }
  0x93   :  { %541 = vst.msk [vmem:[%s1277_s3 + $0x88] sm:$0xff] %vm523_vm3, %v406_v51 }
  0x95   :  { %v445_v52 = vpop.f32.mrf.mxu2  ;;  %v485_v53 = vpop.f32.mrf.mxu3 }
  0x96   :  { %v446_v54 = vadd.f32 %v952_v39, %v445_v52  ;;  %v486_v55 = vadd.f32 %v952_v39, %v485_v53  ;;  %v368_v56 = vpop.f32.mrf.mxu0  ;;  %v408_v57 = vpop.f32.mrf.mxu1 }
  0x97   :  { %v369_v58 = vadd.f32 %v952_v39, %v368_v56  ;;  %v409_v59 = vadd.f32 %v952_v39, %v408_v57 }
  0x98   :  { %557 = vst.msk [vmem:[%s1277_s3 + $0x108] sm:$0xff] %vm523_vm3, %v446_v54 }
  0x99   :  { %573 = vst.msk [vmem:[%s1277_s3 + $0x188] sm:$0xff] %vm523_vm3, %v486_v55 }
  0x9a   :  { %526 = vst.msk [vmem:[%s1277_s3 + $0x10] sm:$0xff] %vm523_vm3, %v369_v58 }
  0x9b   :  { %542 = vst.msk [vmem:[%s1277_s3 + $0x90] sm:$0xff] %vm523_vm3, %v409_v59 }
  0x9d   :  { %v448_v60 = vpop.f32.mrf.mxu2  ;;  %v488_v61 = vpop.f32.mrf.mxu3 }
  0x9e   :  { %v449_v62 = vadd.f32 %v952_v39, %v448_v60  ;;  %v489_v63 = vadd.f32 %v952_v39, %v488_v61  ;;  %v370_v0 = vpop.f32.mrf.mxu0  ;;  %v410_v1 = vpop.f32.mrf.mxu1 }
  0x9f   :  { %v371_v2 = vadd.f32 %v952_v39, %v370_v0  ;;  %v411_v3 = vadd.f32 %v952_v39, %v410_v1 }
  0xa0   :  { %558 = vst.msk [vmem:[%s1277_s3 + $0x110] sm:$0xff] %vm523_vm3, %v449_v62 }
  0xa1   :  { %574 = vst.msk [vmem:[%s1277_s3 + $0x190] sm:$0xff] %vm523_vm3, %v489_v63 }
  0xa2   :  { %527 = vst.msk [vmem:[%s1277_s3 + $0x18] sm:$0xff] %vm523_vm3, %v371_v2 }
  0xa3   :  { %543 = vst.msk [vmem:[%s1277_s3 + $0x98] sm:$0xff] %vm523_vm3, %v411_v3 }
  0xa5   :  { %v450_v4 = vpop.f32.mrf.mxu2  ;;  %v490_v5 = vpop.f32.mrf.mxu3 }
  0xa6   :  { %v451_v6 = vadd.f32 %v952_v39, %v450_v4  ;;  %v491_v7 = vadd.f32 %v952_v39, %v490_v5  ;;  %v373_v8 = vpop.f32.mrf.mxu0  ;;  %v413_v9 = vpop.f32.mrf.mxu1 }
  0xa7   :  { %v374_v10 = vadd.f32 %v952_v39, %v373_v8  ;;  %v414_v11 = vadd.f32 %v952_v39, %v413_v9 }
  0xa8   :  { %559 = vst.msk [vmem:[%s1277_s3 + $0x118] sm:$0xff] %vm523_vm3, %v451_v6 }
  0xa9   :  { %575 = vst.msk [vmem:[%s1277_s3 + $0x198] sm:$0xff] %vm523_vm3, %v491_v7 }
  0xaa   :  { %528 = vst.msk [vmem:[%s1277_s3 + $0x20] sm:$0xff] %vm523_vm3, %v374_v10 }
  0xab   :  { %544 = vst.msk [vmem:[%s1277_s3 + $0xa0] sm:$0xff] %vm523_vm3, %v414_v11 }
  0xad   :  { %v453_v12 = vpop.f32.mrf.mxu2  ;;  %v493_v13 = vpop.f32.mrf.mxu3 }
  0xae   :  { %v454_v14 = vadd.f32 %v952_v39, %v453_v12  ;;  %v494_v15 = vadd.f32 %v952_v39, %v493_v13  ;;  %v375_v16 = vpop.f32.mrf.mxu0  ;;  %v415_v17 = vpop.f32.mrf.mxu1 }
  0xaf   :  { %v376_v18 = vadd.f32 %v952_v39, %v375_v16  ;;  %v416_v19 = vadd.f32 %v952_v39, %v415_v17 }
  0xb0   :  { %560 = vst.msk [vmem:[%s1277_s3 + $0x120] sm:$0xff] %vm523_vm3, %v454_v14 }
  0xb1   :  { %576 = vst.msk [vmem:[%s1277_s3 + $0x1a0] sm:$0xff] %vm523_vm3, %v494_v15 }
  0xb2   :  { %529 = vst.msk [vmem:[%s1277_s3 + $0x28] sm:$0xff] %vm523_vm3, %v376_v18 }
  0xb3   :  { %545 = vst.msk [vmem:[%s1277_s3 + $0xa8] sm:$0xff] %vm523_vm3, %v416_v19 }
  0xb5   :  { %v455_v20 = vpop.f32.mrf.mxu2  ;;  %v495_v21 = vpop.f32.mrf.mxu3 }
  0xb6   :  { %v456_v22 = vadd.f32 %v952_v39, %v455_v20  ;;  %v496_v23 = vadd.f32 %v952_v39, %v495_v21  ;;  %v378_v24 = vpop.f32.mrf.mxu0  ;;  %v418_v25 = vpop.f32.mrf.mxu1 }
  0xb7   :  { %v379_v26 = vadd.f32 %v952_v39, %v378_v24  ;;  %v419_v27 = vadd.f32 %v952_v39, %v418_v25 }
  0xb8   :  { %561 = vst.msk [vmem:[%s1277_s3 + $0x128] sm:$0xff] %vm523_vm3, %v456_v22 }
  0xb9   :  { %577 = vst.msk [vmem:[%s1277_s3 + $0x1a8] sm:$0xff] %vm523_vm3, %v496_v23 }
  0xba   :  { %530 = vst.msk [vmem:[%s1277_s3 + $0x30] sm:$0xff] %vm523_vm3, %v379_v26 }
  0xbb   :  { %546 = vst.msk [vmem:[%s1277_s3 + $0xb0] sm:$0xff] %vm523_vm3, %v419_v27 }
  0xbd   :  { %v458_v28 = vpop.f32.mrf.mxu2  ;;  %v498_v29 = vpop.f32.mrf.mxu3 }
  0xbe   :  { %v459_v30 = vadd.f32 %v952_v39, %v458_v28  ;;  %v499_v31 = vadd.f32 %v952_v39, %v498_v29  ;;  %v380_v32 = vpop.f32.mrf.mxu0  ;;  %v420_v33 = vpop.f32.mrf.mxu1 }
  0xbf   :  { %v381_v34 = vadd.f32 %v952_v39, %v380_v32  ;;  %v421_v35 = vadd.f32 %v952_v39, %v420_v33 }
  0xc0   :  { %562 = vst.msk [vmem:[%s1277_s3 + $0x130] sm:$0xff] %vm523_vm3, %v459_v30 }
  0xc1   :  { %578 = vst.msk [vmem:[%s1277_s3 + $0x1b0] sm:$0xff] %vm523_vm3, %v499_v31 }
  0xc2   :  { %531 = vst.msk [vmem:[%s1277_s3 + $0x38] sm:$0xff] %vm523_vm3, %v381_v34 }
  0xc3   :  { %547 = vst.msk [vmem:[%s1277_s3 + $0xb8] sm:$0xff] %vm523_vm3, %v421_v35 }
  0xc5   :  { %v460_v36 = vpop.f32.mrf.mxu2  ;;  %v500_v37 = vpop.f32.mrf.mxu3 }
  0xc6   :  { %v461_v38 = vadd.f32 %v952_v39, %v460_v36  ;;  %v501_v40 = vadd.f32 %v952_v39, %v500_v37  ;;  %v383_v41 = vpop.f32.mrf.mxu0  ;;  %v423_v42 = vpop.f32.mrf.mxu1 }
  0xc7   :  { %v384_v43 = vadd.f32 %v952_v39, %v383_v41  ;;  %v424_v44 = vadd.f32 %v952_v39, %v423_v42 }
  0xc8   :  { %563 = vst.msk [vmem:[%s1277_s3 + $0x138] sm:$0xff] %vm523_vm3, %v461_v38 }
  0xc9   :  { %579 = vst.msk [vmem:[%s1277_s3 + $0x1b8] sm:$0xff] %vm523_vm3, %v501_v40 }
  0xca   :  { %532 = vst.msk [vmem:[%s1277_s3 + $0x40] sm:$0xff] %vm523_vm3, %v384_v43 }
  0xcb   :  { %548 = vst.msk [vmem:[%s1277_s3 + $0xc0] sm:$0xff] %vm523_vm3, %v424_v44 }
  0xcd   :  { %v463_v45 = vpop.f32.mrf.mxu2  ;;  %v503_v46 = vpop.f32.mrf.mxu3 }
  0xce   :  { %v464_v47 = vadd.f32 %v952_v39, %v463_v45  ;;  %v504_v48 = vadd.f32 %v952_v39, %v503_v46  ;;  %v385_v49 = vpop.f32.mrf.mxu0  ;;  %v425_v50 = vpop.f32.mrf.mxu1 }
  0xcf   :  { %v386_v51 = vadd.f32 %v952_v39, %v385_v49  ;;  %v426_v52 = vadd.f32 %v952_v39, %v425_v50 }
  0xd0   :  { %564 = vst.msk [vmem:[%s1277_s3 + $0x140] sm:$0xff] %vm523_vm3, %v464_v47 }
  0xd1   :  { %580 = vst.msk [vmem:[%s1277_s3 + $0x1c0] sm:$0xff] %vm523_vm3, %v504_v48 }
  0xd2   :  { %533 = vst.msk [vmem:[%s1277_s3 + $0x48] sm:$0xff] %vm523_vm3, %v386_v51 }
  0xd3   :  { %549 = vst.msk [vmem:[%s1277_s3 + $0xc8] sm:$0xff] %vm523_vm3, %v426_v52 }
  0xd5   :  { %v465_v53 = vpop.f32.mrf.mxu2  ;;  %v505_v54 = vpop.f32.mrf.mxu3 }
  0xd6   :  { %v466_v55 = vadd.f32 %v952_v39, %v465_v53  ;;  %v506_v56 = vadd.f32 %v952_v39, %v505_v54  ;;  %v388_v57 = vpop.f32.mrf.mxu0  ;;  %v428_v58 = vpop.f32.mrf.mxu1 }
  0xd7   :  { %v389_v59 = vadd.f32 %v952_v39, %v388_v57  ;;  %v429_v60 = vadd.f32 %v952_v39, %v428_v58 }
  0xd8   :  { %565 = vst.msk [vmem:[%s1277_s3 + $0x148] sm:$0xff] %vm523_vm3, %v466_v55 }
  0xd9   :  { %581 = vst.msk [vmem:[%s1277_s3 + $0x1c8] sm:$0xff] %vm523_vm3, %v506_v56 }
  0xda   :  { %534 = vst.msk [vmem:[%s1277_s3 + $0x50] sm:$0xff] %vm523_vm3, %v389_v59 }
  0xdb   :  { %550 = vst.msk [vmem:[%s1277_s3 + $0xd0] sm:$0xff] %vm523_vm3, %v429_v60 }
  0xdd   :  { %v468_v61 = vpop.f32.mrf.mxu2  ;;  %v508_v62 = vpop.f32.mrf.mxu3 }
  0xde   :  { %v469_v63 = vadd.f32 %v952_v39, %v468_v61  ;;  %v509_v0 = vadd.f32 %v952_v39, %v508_v62  ;;  %v390_v1 = vpop.f32.mrf.mxu0  ;;  %v430_v2 = vpop.f32.mrf.mxu1 }
  0xdf   :  { %v391_v3 = vadd.f32 %v952_v39, %v390_v1  ;;  %v431_v4 = vadd.f32 %v952_v39, %v430_v2 }
  0xe0   :  { %566 = vst.msk [vmem:[%s1277_s3 + $0x150] sm:$0xff] %vm523_vm3, %v469_v63 }
  0xe1   :  { %582 = vst.msk [vmem:[%s1277_s3 + $0x1d0] sm:$0xff] %vm523_vm3, %v509_v0 }
  0xe2   :  { %535 = vst.msk [vmem:[%s1277_s3 + $0x58] sm:$0xff] %vm523_vm3, %v391_v3 }
  0xe3   :  { %551 = vst.msk [vmem:[%s1277_s3 + $0xd8] sm:$0xff] %vm523_vm3, %v431_v4 }
  0xe5   :  { %v470_v5 = vpop.f32.mrf.mxu2  ;;  %v510_v6 = vpop.f32.mrf.mxu3 }
  0xe6   :  { %v471_v7 = vadd.f32 %v952_v39, %v470_v5  ;;  %v511_v8 = vadd.f32 %v952_v39, %v510_v6  ;;  %v393_v9 = vpop.f32.mrf.mxu0  ;;  %v433_v10 = vpop.f32.mrf.mxu1 }
  0xe7   :  { %v394_v11 = vadd.f32 %v952_v39, %v393_v9  ;;  %v434_v12 = vadd.f32 %v952_v39, %v433_v10 }
  0xe8   :  { %567 = vst.msk [vmem:[%s1277_s3 + $0x158] sm:$0xff] %vm523_vm3, %v471_v7 }
  0xe9   :  { %583 = vst.msk [vmem:[%s1277_s3 + $0x1d8] sm:$0xff] %vm523_vm3, %v511_v8 }
  0xea   :  { %536 = vst.msk [vmem:[%s1277_s3 + $0x60] sm:$0xff] %vm523_vm3, %v394_v11 }
  0xeb   :  { %552 = vst.msk [vmem:[%s1277_s3 + $0xe0] sm:$0xff] %vm523_vm3, %v434_v12 }
  0xed   :  { %v473_v13 = vpop.f32.mrf.mxu2  ;;  %v513_v14 = vpop.f32.mrf.mxu3 }
  0xee   :  { %v474_v15 = vadd.f32 %v952_v39, %v473_v13  ;;  %v514_v16 = vadd.f32 %v952_v39, %v513_v14  ;;  %v395_v17 = vpop.f32.mrf.mxu0  ;;  %v435_v18 = vpop.f32.mrf.mxu1 }
  0xef   :  { %v396_v19 = vadd.f32 %v952_v39, %v395_v17  ;;  %v436_v20 = vadd.f32 %v952_v39, %v435_v18 }
  0xf0   :  { %568 = vst.msk [vmem:[%s1277_s3 + $0x160] sm:$0xff] %vm523_vm3, %v474_v15 }
  0xf1   :  { %584 = vst.msk [vmem:[%s1277_s3 + $0x1e0] sm:$0xff] %vm523_vm3, %v514_v16 }
  0xf2   :  { %537 = vst.msk [vmem:[%s1277_s3 + $0x68] sm:$0xff] %vm523_vm3, %v396_v19 }
  0xf3   :  { %553 = vst.msk [vmem:[%s1277_s3 + $0xe8] sm:$0xff] %vm523_vm3, %v436_v20 }
  0xf5   :  { %v475_v21 = vpop.f32.mrf.mxu2  ;;  %v515_v22 = vpop.f32.mrf.mxu3 }
  0xf6   :  { %v476_v23 = vadd.f32 %v952_v39, %v475_v21  ;;  %v516_v24 = vadd.f32 %v952_v39, %v515_v22  ;;  %v398_v25 = vpop.f32.mrf.mxu0  ;;  %v438_v26 = vpop.f32.mrf.mxu1 }
  0xf7   :  { %v399_v27 = vadd.f32 %v952_v39, %v398_v25  ;;  %v439_v28 = vadd.f32 %v952_v39, %v438_v26 }
  0xf8   :  { %569 = vst.msk [vmem:[%s1277_s3 + $0x168] sm:$0xff] %vm523_vm3, %v476_v23 }
  0xf9   :  { %585 = vst.msk [vmem:[%s1277_s3 + $0x1e8] sm:$0xff] %vm523_vm3, %v516_v24 }
  0xfa   :  { %538 = vst.msk [vmem:[%s1277_s3 + $0x70] sm:$0xff] %vm523_vm3, %v399_v27 }
  0xfb   :  { %554 = vst.msk [vmem:[%s1277_s3 + $0xf0] sm:$0xff] %vm523_vm3, %v439_v28 }
  0xfd   :  { %v478_v29 = vpop.f32.mrf.mxu2  ;;  %v518_v30 = vpop.f32.mrf.mxu3 }
  0xfe   :  { %v479_v31 = vadd.f32 %v952_v39, %v478_v29  ;;  %v519_v32 = vadd.f32 %v952_v39, %v518_v30  ;;  %v400_v33 = vpop.f32.mrf.mxu0  ;;  %v440_v34 = vpop.f32.mrf.mxu1 }
  0xff   :  { %v401_v35 = vadd.f32 %v952_v39, %v400_v33  ;;  %v441_v36 = vadd.f32 %v952_v39, %v440_v34 }
 0x100   :  { %570 = vst.msk [vmem:[%s1277_s3 + $0x170] sm:$0xff] %vm523_vm3, %v479_v31 }
 0x101   :  { %586 = vst.msk [vmem:[%s1277_s3 + $0x1f0] sm:$0xff] %vm523_vm3, %v519_v32 }
 0x102   :  { %539 = vst.msk [vmem:[%s1277_s3 + $0x78] sm:$0xff] %vm523_vm3, %v401_v35 }
 0x103   :  { %555 = vst.msk [vmem:[%s1277_s3 + $0xf8] sm:$0xff] %vm523_vm3, %v441_v36 }
 0x105   :  { %v480_v37 = vpop.f32.mrf.mxu2  ;;  %v520_v38 = vpop.f32.mrf.mxu3 }
 0x106   :  { %v481_v40 = vadd.f32 %v952_v39, %v480_v37  ;;  %v521_v41 = vadd.f32 %v952_v39, %v520_v38 }
 0x108   :  { %571 = vst.msk [vmem:[%s1277_s3 + $0x178] sm:$0xff] %vm523_vm3, %v481_v40 }
 0x109   :  { %587 = vst.msk [vmem:[%s1277_s3 + $0x1f8] sm:$0xff] %vm523_vm3, %v521_v41 }

</bundles_post_ra>
